<compile_context>
chip_gen: v5e
topology: v5e:2x2
jax: 0.10.0
libtpu: 0.0.40
codegen_flags: <defaults>
</compile_context>

<pallas_src>
import functools
import math

import jax
import jax.numpy as jnp
from jax.experimental import pallas as pl
from jax.experimental.pallas import tpu as pltpu


def _add_pos_emb_kernel(x_ref, pe_ref, o_ref, *, scale):
    # x_ref/o_ref: (ts, B, tl) or (ts, tl); pe_ref: (1, B, tl) or (1, tl).
    # pe has a constant block index along the row (S) grid axis, so it is
    # DMA'd once per lane block and stays resident; the VPU broadcasts it.
    o_ref[...] = (scale * x_ref[...] + pe_ref[...]).astype(o_ref.dtype)


def _vmem_budget_bytes():
    """Per-generation VMEM budget (v5e/v6e: 128 MiB, v7x: 64 MiB physical)."""
    try:
        cap = pltpu.get_tpu_info().vmem_capacity_bytes
    except Exception:
        cap = 64 << 20            # conservative fallback = v7x physical VMEM
    return int(cap * 0.6)         # leave headroom for compiler-internal scratch


def _pick_blocks(S, lane_extent, bytes_per_row_lane, tile_budget):
    """Pick (row_block, lane_block); tile bytes = ts * tl * bytes_per_row_lane."""
    ts_min = S if S <= 8 else 8
    # Lane block: multiple of 128 or full extent, sized so >= 8 rows fit.
    if lane_extent % 128 != 0:
        tl = lane_extent                       # full extent (exempt from 128 rule)
    else:
        max_tl = max(tile_budget // (ts_min * bytes_per_row_lane), 1)
        tl = lane_extent if max_tl >= lane_extent else max(128, (max_tl // 128) * 128)

    # Row block: as many rows as fit the tile budget, 8-aligned when partial.
    max_ts = max(tile_budget // (tl * bytes_per_row_lane), 1)
    if S <= 8:
        ts = S
    else:
        ts = min(S, max(8, (max_ts // 8) * 8))
        # Keep >= 2 row blocks so the "parallel" grid axis can shard across
        # both TensorCores on v7x (and DMA/compute overlap everywhere).
        half = (pl.cdiv(S, 2) // 8) * 8
        if half >= 8:
            ts = min(ts, half)
    return ts, tl


def learned_positional_embeddings(x, embedding_table, *, scale=True,
                                  block_rows=None, in_place=False):
    """x: [S, B, D]; embedding_table: [max_len, D] (max_len >= B).

    Matches the PyTorch module: positions = arange(x.size(1)) == arange(B),
    so pe = table[:B] is broadcast over the sequence axis.
    """
    S, B, D = x.shape
    scale_val = math.sqrt(D) if scale else 1.0
    itemsize = x.dtype.itemsize

    budget = _vmem_budget_bytes()
    pe_bytes = B * D * itemsize
    # x and out tiles, each double-buffered, plus the small resident pe slice.
    tile_budget = max((budget - 2 * pe_bytes) // 4, 8 * 128 * itemsize)
    tile_budget = min(tile_budget, 16 << 20)

    use_3d = (D % 128 == 0)
    if use_3d:
        # Native [S, B, D] layout: last dim is already lane-dense, no relayout
        # copies around the pallas_call.
        x_in = x
        pe = embedding_table[:B, :].reshape(1, B, D)
        lane_extent, bytes_per_row_lane = D, B * itemsize
    else:
        # Narrow-D fallback (toy configs): flatten to [S, B*D] for lane density.
        x_in = x.reshape(S, B * D)
        pe = embedding_table[:B, :].reshape(1, B * D)
        lane_extent, bytes_per_row_lane = B * D, itemsize

    ts, tl = _pick_blocks(S, lane_extent, bytes_per_row_lane, tile_budget)
    if block_rows is not None:
        ts = min(block_rows, S)

    grid = (pl.cdiv(S, ts), pl.cdiv(lane_extent, tl))
    if use_3d:
        x_spec = pl.BlockSpec((ts, B, tl), lambda i, j: (i, 0, j))
        pe_spec = pl.BlockSpec((1, B, tl), lambda i, j: (0, 0, j))
        out_shape = jax.ShapeDtypeStruct((S, B, D), x.dtype)
    else:
        x_spec = pl.BlockSpec((ts, tl), lambda i, j: (i, j))
        pe_spec = pl.BlockSpec((1, tl), lambda i, j: (0, j))
        out_shape = jax.ShapeDtypeStruct((S, B * D), x.dtype)

    kernel = functools.partial(_add_pos_emb_kernel, scale=scale_val)

    out = pl.pallas_call(
        kernel,
        out_shape=out_shape,
        grid_spec=pl.GridSpec(
            grid=grid,
            in_specs=[x_spec, pe_spec],
            out_specs=x_spec,
        ),
        compiler_params=pltpu.CompilerParams(
            dimension_semantics=("parallel", "parallel"),
            vmem_limit_bytes=budget,
        ),
        # Footprint (not bandwidth) win when x is dead after this op.
        input_output_aliases={0: 0} if in_place else {},
    )(x_in, pe)

    # TODO(synk): nn.Dropout(p=0.1) is identity in eval mode; training-mode
    # stochastic dropout (pltpu.prng_*) intentionally not applied here.
    return out if use_3d else out.reshape(S, B, D)


if __name__ == "__main__":
    key = jax.random.PRNGKey(0)
    kx, kw, kx2, kw2, kx3, kw3 = jax.random.split(key, 6)

    # --- Small config (narrow D -> lane-dense flatten fallback path) --------
    d_model, max_len, seq_len, batch = 32, 64, 8, 4
    x = jax.random.normal(kx, (seq_len, batch, d_model), dtype=jnp.float32)
    table = jax.random.normal(kw, (max_len, d_model), dtype=jnp.float32)

    out = learned_positional_embeddings(x, table, scale=True)
    out = jax.block_until_ready(out)
    ref = math.sqrt(d_model) * x + table[:batch, :][None, :, :]
    assert out.shape == (seq_len, batch, d_model)
    assert jnp.allclose(out, ref, atol=1e-5, rtol=1e-5)

    # --- 3-D native-layout path, explicit row blocking (grid of 4 steps) -----
    d2, s2, b2 = 128, 256, 4
    x_big = jax.random.normal(kx2, (s2, b2, d2), dtype=jnp.float32)
    table_big = jax.random.normal(kw2, (512, d2), dtype=jnp.float32)
    out_big = learned_positional_embeddings(x_big, table_big, scale=True,
                                            block_rows=64)
    out_big = jax.block_until_ready(out_big)
    ref_big = math.sqrt(d2) * x_big + table_big[:b2, :][None, :, :]
    assert jnp.allclose(out_big, ref_big, atol=1e-5, rtol=1e-5)

    # --- 3-D path, automatic tiling (exercises the >=2-step / megacore cap) --
    d3, s3, b3 = 256, 64, 8
    x3 = jax.random.normal(kx3, (s3, b3, d3), dtype=jnp.float32)
    table3 = jax.random.normal(kw3, (128, d3), dtype=jnp.float32)
    ref3 = math.sqrt(d3) * x3 + table3[:b3, :][None, :, :]
    f_inplace = jax.jit(functools.partial(learned_positional_embeddings,
                                          scale=True, in_place=True))
    out3 = jax.block_until_ready(f_inplace(x3, table3))
    assert jnp.allclose(out3, ref3, atol=1e-5, rtol=1e-5)

    print("KERNEL_OK")
</pallas_src>

<mosaic_0001>
module attributes {stable_mosaic.version = 11 : i64} {
  func.func @_add_pos_emb_kernel(%arg0: i32, %arg1: i32, %arg2: memref<8x128xf32, #tpu.memory_space<vmem>>, %arg3: memref<1x128xf32, #tpu.memory_space<vmem>>, %arg4: memref<8x128xf32, #tpu.memory_space<vmem>>) attributes {dimension_semantics = [#tpu.dimension_semantics<parallel>, #tpu.dimension_semantics<parallel>], iteration_bounds = array<i64: 1, 1>, scalar_prefetch = 0 : i64, scratch_operands = 0 : i64, tpu.core_type = #tpu.core_type<tc>, window_params = [{transform_indices = @transform_0, window_bounds = array<i64: 8, 128>}, {transform_indices = @transform_1, window_bounds = array<i64: 1, 128>}, {transform_indices = @transform_2, window_bounds = array<i64: 8, 128>}]} {
    %c0 = arith.constant 0 : index
    %c0_0 = arith.constant 0 : index
    %0 = vector.load %arg2[%c0, %c0_0] : memref<8x128xf32, #tpu.memory_space<vmem>>, vector<8x128xf32>
    %cst = arith.constant 5.65685415 : f32
    %1 = vector.broadcast %cst : f32 to vector<8x128xf32>
    %2 = arith.mulf %1, %0 : vector<8x128xf32>
    %c0_1 = arith.constant 0 : index
    %c0_2 = arith.constant 0 : index
    %3 = vector.load %arg3[%c0_1, %c0_2] : memref<1x128xf32, #tpu.memory_space<vmem>>, vector<1x128xf32>
    %4 = vector.broadcast %3 : vector<1x128xf32> to vector<8x128xf32>
    %5 = arith.addf %2, %4 : vector<8x128xf32>
    %c0_3 = arith.constant 0 : index
    %c0_4 = arith.constant 0 : index
    %6 = vector.load %arg4[%c0_3, %c0_4] : memref<8x128xf32, #tpu.memory_space<vmem>>, vector<8x128xf32>
    tpu.vector_store %arg4[%c0_3, %c0_4], %5 {strides = array<i32>} : memref<8x128xf32, #tpu.memory_space<vmem>>, vector<8x128xf32>,
    return
  }
  func.func @transform_0(%arg0: i32, %arg1: i32) -> (i32, i32) {
    %c0_i32 = arith.constant 0 : i32
    return %arg0, %arg1 : i32, i32
  }
  func.func @transform_1(%arg0: i32, %arg1: i32) -> (i32, i32) {
    %c0_i32 = arith.constant 0 : i32
    %c0_i32_0 = arith.constant 0 : i32
    return %c0_i32, %arg1 : i32, i32
  }
  func.func @transform_2(%arg0: i32, %arg1: i32) -> (i32, i32) {
    %c0_i32 = arith.constant 0 : i32
    return %arg0, %arg1 : i32, i32
  }
}

</mosaic_0001>

<bundles_post_ra>
// kernel: tpu_custom_call.1
= control target key start
LH: loop header
LB: loop body
LE: loop exit
PB: predicated region body
PF: predicated region fallthrough
CT: control target
= control target key end

     0   :  { %7 = vsyncpa [#allocation3], 0  ;;  %s175_s0 = inlined_call_operand.hbm [shape: f32[8,128], index: 0, kind: input, shape index: {}]   ;;  %s176_s1 = inlined_call_operand.hbm [shape: f32[1,128], index: 1, kind: input, shape index: {}]   ;;  %s177_s2 = inlined_call_operand.hbm [shape: f32[8,128], index: 2, kind: output, shape index: {}]  }
   0x1   :  { %8 = vsyncpa [#allocation6], 0 }
   0x2   :  { %9 = vsyncpa [#allocation4], 0  ;;  %s15_s11 = sshll.u32 %s175_s0, 4  ;;  %s148_s12 = smov [#allocation2]   ;;  %s16_s11 = int_to_ptr.hbm [resolvable:$true] %s15_s11 }
   0x3   :  { %s17_s13 = sshll.u32 %s148_s12, 4  ;;  %s26_s16 = sshll.u32 %s176_s1, 4  ;;  %s18_s13 = int_to_ptr.vmem [resolvable:$true] %s17_s13  ;;  %s27_s16 = int_to_ptr.hbm [resolvable:$true] %s26_s16 }
   0x4   :  { %20 = dma.hbm_to_vmem [thread:$0]  %s16_s11, 128, %s18_s13, [#allocation3]  }
   0x5   :  { %s149_s17 = smov [#allocation5]  }
   0x6   :  { %s28_s18 = sshll.u32 %s149_s17, 4  ;;  %s29_s18 = int_to_ptr.vmem [resolvable:$true] %s28_s18 }
   0x7   :  { %31 = dma.hbm_to_vmem [thread:$0]  %s27_s16, 16, %s29_s18, [#allocation6]  }
   0x8   :  { %142 = dma.done.wait [#allocation3], 128  }
   0x9   :  { %143 = vsyncadd [#allocation3], 4294967168 }
   0xa   :  { %144 = dma.done.wait [#allocation6], 16  }
   0xb   :  { %145 = vsyncadd [#allocation6], 4294967280  ;;  %s55_s20 = sshll.u32 %s177_s2, 4  ;;  %v40_v0 = vld [vmem:[#allocation2] sm:$0xff]  ;;  %v69_v1 = vld [vmem:[#allocation5] ss:$0 sm:$0xff]  ;;  %s56_s20 = int_to_ptr.hbm [resolvable:$true] %s55_s20 }
   0xc   :  { %s150_s21 = smov [#allocation7]   ;;  %v41_v2 = vmul.f32 5.656854, %v40_v0 }
   0xd   :  { %s53_s22 = sshll.u32 %s150_s21, 4  ;;  %s54_s22 = int_to_ptr.vmem [resolvable:$true] %s53_s22 }
   0xe   :  { %v46_v3 = vadd.f32 %v69_v1, %v41_v2 }
  0x10   :  { %47 = vst [vmem:[#allocation7] sm:$0xff] %v46_v3 }
  0x11   :  { %58 = dma.vmem_to_hbm [thread:$0]  %s54_s22, 128, %s56_s20, [#allocation4]  }
  0x12   :  { %146 = dma.done.wait [#allocation4], 128  }
  0x13   :  { %147 = vsyncadd [#allocation4], 4294967168 }
  0x14   :  { %63 = vsyncpa [#allocation3], 1 }
  0x15   :  { %64 = vsyncpa [#allocation6], 1 }
  0x16   :  { %65 = vsyncpa [#allocation4], 1 }

</bundles_post_ra>
